<compile_context>
chip_gen: v7x
topology: tpu7x:2x2x1
jax: 0.10.0
libtpu: 0.0.40
codegen_flags: <defaults>
</compile_context>

<pallas_src>
import jax
import jax.numpy as jnp
from jax.experimental import pallas as pl
from jax.experimental.pallas import tpu as pltpu

LANE = 128
_VMEM_LIMIT = 32 * 1024 * 1024   # safe scoped-VMEM ceiling on v5e/v6e/v7x
_MAX_ROWS = 256                  # row-tile cap when problems get large


def _round_up(x, m):
    return ((x + m - 1) // m) * m


# ---------------------------------------------------------------------------
# Kernel 1: fused entity projection + packed scalar attention heads
# ---------------------------------------------------------------------------

def _entity_proj_kernel(x_ref, w_ref, a_ref, y_ref, s_ref):
    # one wide MXU pass: relu(x @ [w_h | w_t])  -> (tm, 2C)
    y = jnp.maximum(
        jnp.dot(x_ref[...], w_ref[...], preferred_element_type=jnp.float32), 0.0)
    y_ref[...] = y
    # packed block-diagonal scalar heads, lane-padded to 128  -> (tm, 128)
    s_ref[...] = jnp.dot(y, a_ref[...], preferred_element_type=jnp.float32)


def entity_proj(x_e, w_ht, a_pack):
    N, E_h = x_e.shape
    C2 = w_ht.shape[1]
    P = a_pack.shape[1]
    if N <= _MAX_ROWS:
        tm, Np = N, N                      # single grid step at small N
    else:
        tm = _MAX_ROWS
        Np = _round_up(N, tm)
    x_pad = x_e if Np == N else jnp.pad(x_e, ((0, Np - N), (0, 0)))
    y, s = pl.pallas_call(
        _entity_proj_kernel,
        out_shape=(jax.ShapeDtypeStruct((Np, C2), jnp.float32),
                   jax.ShapeDtypeStruct((Np, P), jnp.float32)),
        grid=(Np // tm,),
        in_specs=[pl.BlockSpec((tm, E_h), lambda i: (i, 0)),
                  pl.BlockSpec((E_h, C2), lambda i: (0, 0)),
                  pl.BlockSpec((C2, P), lambda i: (0, 0))],
        out_specs=(pl.BlockSpec((tm, C2), lambda i: (i, 0)),
                   pl.BlockSpec((tm, P), lambda i: (i, 0))),
        compiler_params=pltpu.CompilerParams(
            dimension_semantics=("parallel",),
            vmem_limit_bytes=_VMEM_LIMIT),
    )(x_pad, w_ht, a_pack)
    return y[:N], s[:N]


# ---------------------------------------------------------------------------
# Kernel 2: per-edge scale + L2 normalize + packed a_t2/a_t3 heads
# ---------------------------------------------------------------------------

def _edge_kernel(xt_ref, alpha_ref, a23_ref, xtn_ref, s_ref):
    xt = xt_ref[...] * alpha_ref[...]                       # (te, C) * (te, 1)
    ssq = jnp.sum(xt * xt, axis=1, keepdims=True)
    # F.normalize(dim=1, p=2): x / max(||x||, 1e-12)  ->  rsqrt on the EUP
    inv = jax.lax.rsqrt(jnp.maximum(ssq, 1e-24))
    xt = xt * inv
    xtn_ref[...] = xt
    s_ref[...] = jnp.dot(xt, a23_ref[...], preferred_element_type=jnp.float32)


def edge_transform(x_t_gather, alpha, a_t23_pack):
    # TODO(synk): at large edge counts, fuse the x_r_t[edge_t] gather in here
    # via PrefetchScalarGridSpec + data-dependent index_map instead of
    # materializing the gathered (E, C) tensor in HBM.
    E, C = x_t_gather.shape
    P = a_t23_pack.shape[1]
    if E <= _MAX_ROWS:
        te, Ep = E, E
    else:
        te = _MAX_ROWS
        Ep = _round_up(E, te)
    if Ep != E:
        x_t_gather = jnp.pad(x_t_gather, ((0, Ep - E), (0, 0)))
        alpha = jnp.pad(alpha, ((0, Ep - E), (0, 0)))
    xt, s = pl.pallas_call(
        _edge_kernel,
        out_shape=(jax.ShapeDtypeStruct((Ep, C), jnp.float32),
                   jax.ShapeDtypeStruct((Ep, P), jnp.float32)),
        grid=(Ep // te,),
        in_specs=[pl.BlockSpec((te, C), lambda i: (i, 0)),
                  pl.BlockSpec((te, 1), lambda i: (i, 0)),
                  pl.BlockSpec((C, P), lambda i: (0, 0))],
        out_specs=(pl.BlockSpec((te, C), lambda i: (i, 0)),
                   pl.BlockSpec((te, P), lambda i: (i, 0))),
        compiler_params=pltpu.CompilerParams(
            dimension_semantics=("parallel",),
            vmem_limit_bytes=_VMEM_LIMIT),
    )(x_t_gather, alpha, a_t23_pack)
    return xt[:E], s[:E]


# ---------------------------------------------------------------------------
# Kernel 3: highway gate + mix
# ---------------------------------------------------------------------------

def _highway_kernel(xrh_ref, xeh_ref, w_ref, b_ref, o_ref):
    z = jnp.dot(xrh_ref[...], w_ref[...],
                preferred_element_type=jnp.float32) + b_ref[...]
    # sigmoid via EUP exp + approx reciprocal (separate bundle slot)
    gate = pl.reciprocal(1.0 + jnp.exp(-z), approx=True)
    o_ref[...] = gate * xeh_ref[...] + (1.0 - gate) * xrh_ref[...]


def highway(x_r_h, x_e_h, w_lin, b_lin):
    N, C = x_r_h.shape
    if N <= _MAX_ROWS:
        tm, Np = N, N
    else:
        tm = _MAX_ROWS
        Np = _round_up(N, tm)
    if Np != N:
        x_r_h = jnp.pad(x_r_h, ((0, Np - N), (0, 0)))
        x_e_h = jnp.pad(x_e_h, ((0, Np - N), (0, 0)))
    out = pl.pallas_call(
        _highway_kernel,
        out_shape=jax.ShapeDtypeStruct((Np, C), jnp.float32),
        grid=(Np // tm,),
        in_specs=[pl.BlockSpec((tm, C), lambda i: (i, 0)),
                  pl.BlockSpec((tm, C), lambda i: (i, 0)),
                  pl.BlockSpec((C, C), lambda i: (0, 0)),
                  pl.BlockSpec((1, C), lambda i: (0, 0))],
        out_specs=pl.BlockSpec((tm, C), lambda i: (i, 0)),
        compiler_params=pltpu.CompilerParams(
            dimension_semantics=("parallel",),
            vmem_limit_bytes=_VMEM_LIMIT),
    )(x_r_h, x_e_h, w_lin, b_lin)
    return out[:N]


# ---------------------------------------------------------------------------
# JAX glue (gathers, segment softmax, spmm scatter)
# ---------------------------------------------------------------------------

def leaky_relu(x, slope=0.01):        # F.leaky_relu default negative_slope
    return jnp.where(x > 0, x, slope * x)


def segment_softmax(src, index, num_segments):
    # torch_geometric.utils.softmax semantics
    m = jax.ops.segment_max(src, index, num_segments=num_segments)
    out = jnp.exp(src - m[index])
    denom = jax.ops.segment_sum(out, index, num_segments=num_segments)
    return out / (denom[index] + 1e-16)


def _pack_entity_heads(params, C):
    # block-diagonal packing, lane-padded to 128:
    #   cols 0..3: a_h1..a_h4 acting on x_r_h (rows 0:C)
    #   col  4   : a_t1       acting on x_r_t (rows C:2C)
    a = jnp.zeros((2 * C, LANE), jnp.float32)
    a = a.at[:C, 0:1].set(params['a_h1'])
    a = a.at[:C, 1:2].set(params['a_h2'])
    a = a.at[:C, 2:3].set(params['a_h3'])
    a = a.at[:C, 3:4].set(params['a_h4'])
    a = a.at[C:, 4:5].set(params['a_t1'])
    return a


def _pack_edge_heads(params, C):
    a = jnp.zeros((C, LANE), jnp.float32)
    a = a.at[:, 0:1].set(params['a_t2'])
    a = a.at[:, 1:2].set(params['a_t3'])
    return a


def gat_e_to_r_forward(params, x_e, edge_index, rel, triple_num, r_emb,
                       class_index, head_class, *, num_triple_groups,
                       num_classes):
    N_e = x_e.shape[0]
    C = params['w_h'].shape[1]
    edge_h, edge_t = edge_index[0], edge_index[1]

    # --- fused entity projections + packed scalar heads (Pallas) -----------
    w_ht = jnp.concatenate([params['w_h'], params['w_t']], axis=1)   # (E_h, 2C)
    a_pack = _pack_entity_heads(params, C)                           # (2C, 128)
    y, s = entity_proj(x_e, w_ht, a_pack)
    x_r_h, x_r_t = y[:, :C], y[:, C:]
    ah1, ah2, ah3, ah4, at1 = s[:, 0], s[:, 1], s[:, 2], s[:, 3], s[:, 4]

    # --- relation scalar heads: tiny matvec, let XLA fuse it ---------------
    a_r12 = jnp.concatenate([params['a_r1'], params['a_r2']], axis=1)  # (R_h, 2)
    s_r = jnp.dot(r_emb, a_r12)
    ar1, ar2 = s_r[:, 0], s_r[:, 1]

    e1 = (ah1[edge_h] + at1[edge_t]) / 2.0 + ar1[rel]
    alpha = segment_softmax(leaky_relu(e1), triple_num, num_triple_groups)

    # --- per-edge scale/normalize + a_t2/a_t3 heads (Pallas) ---------------
    a_t23_pack = _pack_edge_heads(params, C)                         # (C, 128)
    x_t, s23 = edge_transform(x_r_t[edge_t], alpha[:, None], a_t23_pack)
    e_t, e_r_e_t = s23[:, 0], s23[:, 1]

    e_h = ah2[edge_h]
    e_r = ar2[rel]
    e_r_e_h = ah3[edge_h]
    e_r = (e_r + (e_r_e_h + e_r_e_t) / 2.0) / 2.0
    e = e_t + e_r + e_h
    beta = segment_softmax(leaky_relu(e), class_index, num_classes)

    # spmm #1 (torch_sparse semantics): x_class[class_index[k]] += beta[k] * x_t[edge_t[k]]
    # TODO(synk): data-dependent scatter reduction stays in plain JAX (segment_sum).
    x_class = jax.ops.segment_sum(beta[:, None] * x_t[edge_t], class_index,
                                  num_segments=num_classes)

    # a_c head: tiny matvec, plain XLA
    e_c = jnp.dot(x_class, params['a_c'])[:, 0] + ah4[head_class]
    gama = segment_softmax(leaky_relu(e_c), head_class, N_e)

    # spmm #2: x_e_h[head_class[i]] += gama[i] * x_class[i]
    x_e_h = jax.ops.segment_sum(gama[:, None] * x_class, head_class,
                                num_segments=N_e)

    # --- Highway combine (Pallas) ------------------------------------------
    return highway(x_r_h, x_e_h, params['lin_w'], params['lin_b'])


# ---------------------------------------------------------------------------
# Main
# ---------------------------------------------------------------------------

if __name__ == "__main__":
    key = jax.random.PRNGKey(0)
    N_e, E_HID, C_HID, R_HID = 64, 64, 128, 32   # entities, e_hidden, c_hidden, r_hidden
    N_r, E, N_C = 16, 128, 8                     # relations, edges, classes

    ks = jax.random.split(key, 20)

    def u(k, shape, scale=0.1):
        return jax.random.uniform(k, shape, jnp.float32, -scale, scale)

    params = {
        'w_h':  u(ks[0], (E_HID, C_HID)),
        'w_t':  u(ks[1], (E_HID, C_HID)),
        'a_h1': u(ks[2], (C_HID, 1)),
        'a_h2': u(ks[3], (C_HID, 1)),
        'a_h3': u(ks[4], (C_HID, 1)),
        'a_h4': u(ks[5], (C_HID, 1)),
        'a_t1': u(ks[6], (C_HID, 1)),
        'a_t2': u(ks[7], (C_HID, 1)),
        'a_t3': u(ks[8], (C_HID, 1)),
        'a_r1': u(ks[9], (R_HID, 1)),
        'a_r2': u(ks[10], (R_HID, 1)),
        'a_c':  u(ks[11], (C_HID, 1)),
        'lin_w': u(ks[12], (C_HID, C_HID)),
        'lin_b': u(ks[13], (1, C_HID)),
    }

    x_e = u(ks[14], (N_e, E_HID), 1.0)
    r_emb = u(ks[15], (N_r, R_HID), 1.0)
    edge_index = jax.random.randint(ks[16], (2, E), 0, N_e, dtype=jnp.int32)
    rel = jax.random.randint(ks[17], (E,), 0, N_r, dtype=jnp.int32)
    triple_num = edge_index[0]                                   # group edges by head
    class_index = jax.random.randint(ks[18], (E,), 0, N_C, dtype=jnp.int32)
    head_class = jax.random.randint(ks[19], (N_C,), 0, N_e, dtype=jnp.int32)

    fwd = jax.jit(lambda xe, ei, rl, tn, re, ci, hc: gat_e_to_r_forward(
        params, xe, ei, rl, tn, re, ci, hc,
        num_triple_groups=N_e, num_classes=N_C))

    out = fwd(x_e, edge_index, rel, triple_num, r_emb, class_index, head_class)
    jax.block_until_ready(out)
    assert out.shape == (N_e, C_HID) and out.dtype == jnp.float32
    assert bool(jnp.all(jnp.isfinite(out)))
    print("KERNEL_OK")
</pallas_src>

<mosaic_0001>
module attributes {stable_mosaic.version = 11 : i64} {
  func.func private @main(%arg0: i32) attributes {dimension_semantics = [#tpu.dimension_semantics<core_parallel>], iteration_bounds = array<i64: 2>, tpu.core_type = #tpu.core_type<sc_scalar_subcore>, window_params = []} {
    return
  }
}

module attributes {stable_mosaic.version = 11 : i64} {
  func.func private @main(%arg0: i32) attributes {dimension_semantics = [#tpu.dimension_semantics<core_parallel>], iteration_bounds = array<i64: 2>, tpu.core_type = #tpu.core_type<sc_scalar_subcore>, window_params = []} {
    return
  }
}

module attributes {stable_mosaic.version = 11 : i64} {
  func.func @_entity_proj_kernel(%arg0: i32, %arg1: memref<64x64xf32, #tpu.memory_space<vmem>>, %arg2: memref<64x256xf32, #tpu.memory_space<vmem>>, %arg3: memref<256x128xf32, #tpu.memory_space<vmem>>, %arg4: memref<64x256xf32, #tpu.memory_space<vmem>>, %arg5: memref<64x128xf32, #tpu.memory_space<vmem>>) attributes {dimension_semantics = [#tpu.dimension_semantics<parallel>], iteration_bounds = array<i64: 1>, scalar_prefetch = 0 : i64, scratch_operands = 0 : i64, tpu.core_type = #tpu.core_type<tc>, window_params = [{transform_indices = @transform_0, window_bounds = array<i64: 64, 64>}, {pipeline_mode = #tpu.pipeline_mode<synchronous>, transform_indices = @transform_1, window_bounds = array<i64: 64, 256>}, {pipeline_mode = #tpu.pipeline_mode<synchronous>, transform_indices = @transform_2, window_bounds = array<i64: 256, 128>}, {transform_indices = @transform_3, window_bounds = array<i64: 64, 256>}, {transform_indices = @transform_4, window_bounds = array<i64: 64, 128>}]} {
    %c0 = arith.constant 0 : index
    %c0_0 = arith.constant 0 : index
    %0 = vector.load %arg1[%c0, %c0_0] : memref<64x64xf32, #tpu.memory_space<vmem>>, vector<64x64xf32>
    %c0_1 = arith.constant 0 : index
    %c0_2 = arith.constant 0 : index
    %1 = vector.load %arg2[%c0_1, %c0_2] : memref<64x256xf32, #tpu.memory_space<vmem>>, vector<64x256xf32>
    %cst = arith.constant dense<0.000000e+00> : vector<64x256xf32>
    %2 = tpu.matmul %0, %1, %cst {dimension_numbers = #tpu.dot_dimension_numbers<[1], [0], [0], [1], [0, 0, 1, 1], [], []>} : vector<64x64xf32>, vector<64x256xf32>, vector<64x256xf32> -> vector<64x256xf32>
    %cst_3 = arith.constant 0.000000e+00 : f32
    %3 = vector.broadcast %cst_3 : f32 to vector<64x256xf32>
    %4 = arith.maximumf %2, %3 : vector<64x256xf32>
    %c0_4 = arith.constant 0 : index
    %c0_5 = arith.constant 0 : index
    %5 = vector.load %arg4[%c0_4, %c0_5] : memref<64x256xf32, #tpu.memory_space<vmem>>, vector<64x256xf32>
    tpu.vector_store %arg4[%c0_4, %c0_5], %4 {strides = array<i32>} : memref<64x256xf32, #tpu.memory_space<vmem>>, vector<64x256xf32>,
    %c0_6 = arith.constant 0 : index
    %c0_7 = arith.constant 0 : index
    %6 = vector.load %arg3[%c0_6, %c0_7] : memref<256x128xf32, #tpu.memory_space<vmem>>, vector<256x128xf32>
    %cst_8 = arith.constant dense<0.000000e+00> : vector<64x128xf32>
    %7 = tpu.matmul %4, %6, %cst_8 {dimension_numbers = #tpu.dot_dimension_numbers<[1], [0], [0], [1], [0, 0, 1, 1], [], []>} : vector<64x256xf32>, vector<256x128xf32>, vector<64x128xf32> -> vector<64x128xf32>
    %c0_9 = arith.constant 0 : index
    %c0_10 = arith.constant 0 : index
    %8 = vector.load %arg5[%c0_9, %c0_10] : memref<64x128xf32, #tpu.memory_space<vmem>>, vector<64x128xf32>
    tpu.vector_store %arg5[%c0_9, %c0_10], %7 {strides = array<i32>} : memref<64x128xf32, #tpu.memory_space<vmem>>, vector<64x128xf32>,
    return
  }
  func.func @transform_0(%arg0: i32) -> (i32, i32) {
    %c0_i32 = arith.constant 0 : i32
    %c0_i32_0 = arith.constant 0 : i32
    return %arg0, %c0_i32 : i32, i32
  }
  func.func @transform_1(%arg0: i32) -> (i32, i32) {
    %c0_i32 = arith.constant 0 : i32
    %c0_i32_0 = arith.constant 0 : i32
    %c0_i32_1 = arith.constant 0 : i32
    return %c0_i32, %c0_i32_0 : i32, i32
  }
  func.func @transform_2(%arg0: i32) -> (i32, i32) {
    %c0_i32 = arith.constant 0 : i32
    %c0_i32_0 = arith.constant 0 : i32
    %c0_i32_1 = arith.constant 0 : i32
    return %c0_i32, %c0_i32_0 : i32, i32
  }
  func.func @transform_3(%arg0: i32) -> (i32, i32) {
    %c0_i32 = arith.constant 0 : i32
    %c0_i32_0 = arith.constant 0 : i32
    return %arg0, %c0_i32 : i32, i32
  }
  func.func @transform_4(%arg0: i32) -> (i32, i32) {
    %c0_i32 = arith.constant 0 : i32
    %c0_i32_0 = arith.constant 0 : i32
    return %arg0, %c0_i32 : i32, i32
  }
}

module attributes {stable_mosaic.version = 11 : i64} {
  func.func @_edge_kernel(%arg0: i32, %arg1: memref<128x128xf32, #tpu.memory_space<vmem>>, %arg2: memref<128x1xf32, #tpu.memory_space<vmem>>, %arg3: memref<128x128xf32, #tpu.memory_space<vmem>>, %arg4: memref<128x128xf32, #tpu.memory_space<vmem>>, %arg5: memref<128x128xf32, #tpu.memory_space<vmem>>) attributes {dimension_semantics = [#tpu.dimension_semantics<parallel>], iteration_bounds = array<i64: 1>, scalar_prefetch = 0 : i64, scratch_operands = 0 : i64, tpu.core_type = #tpu.core_type<tc>, window_params = [{transform_indices = @transform_0, window_bounds = array<i64: 128, 128>}, {transform_indices = @transform_1, window_bounds = array<i64: 128, 1>}, {pipeline_mode = #tpu.pipeline_mode<synchronous>, transform_indices = @transform_2, window_bounds = array<i64: 128, 128>}, {transform_indices = @transform_3, window_bounds = array<i64: 128, 128>}, {transform_indices = @transform_4, window_bounds = array<i64: 128, 128>}]} {
    %c0 = arith.constant 0 : index
    %c0_0 = arith.constant 0 : index
    %0 = vector.load %arg1[%c0, %c0_0] : memref<128x128xf32, #tpu.memory_space<vmem>>, vector<128x128xf32>
    %c0_1 = arith.constant 0 : index
    %c0_2 = arith.constant 0 : index
    %1 = vector.load %arg2[%c0_1, %c0_2] : memref<128x1xf32, #tpu.memory_space<vmem>>, vector<128x1xf32>
    %2 = vector.broadcast %1 : vector<128x1xf32> to vector<128x128xf32>
    %3 = arith.mulf %0, %2 : vector<128x128xf32>
    %4 = arith.mulf %3, %3 : vector<128x128xf32>
    %cst = arith.constant dense<0.000000e+00> : vector<128xf32>
    %5 = vector.multi_reduction <add>, %4, %cst [1] : vector<128x128xf32> to vector<128xf32>
    %6 = vector.shape_cast %5 : vector<128xf32> to vector<128x1xf32>
    %cst_3 = arith.constant 1.000000e-24 : f32
    %7 = vector.broadcast %cst_3 : f32 to vector<128x1xf32>
    %8 = arith.maximumf %6, %7 : vector<128x1xf32>
    %9 = math.rsqrt %8 : vector<128x1xf32>
    %10 = vector.broadcast %9 : vector<128x1xf32> to vector<128x128xf32>
    %11 = arith.mulf %3, %10 : vector<128x128xf32>
    %c0_4 = arith.constant 0 : index
    %c0_5 = arith.constant 0 : index
    %12 = vector.load %arg4[%c0_4, %c0_5] : memref<128x128xf32, #tpu.memory_space<vmem>>, vector<128x128xf32>
    tpu.vector_store %arg4[%c0_4, %c0_5], %11 {strides = array<i32>} : memref<128x128xf32, #tpu.memory_space<vmem>>, vector<128x128xf32>,
    %c0_6 = arith.constant 0 : index
    %c0_7 = arith.constant 0 : index
    %13 = vector.load %arg3[%c0_6, %c0_7] : memref<128x128xf32, #tpu.memory_space<vmem>>, vector<128x128xf32>
    %cst_8 = arith.constant dense<0.000000e+00> : vector<128x128xf32>
    %14 = tpu.matmul %11, %13, %cst_8 {dimension_numbers = #tpu.dot_dimension_numbers<[1], [0], [0], [1], [0, 0, 1, 1], [], []>} : vector<128x128xf32>, vector<128x128xf32>, vector<128x128xf32> -> vector<128x128xf32>
    %c0_9 = arith.constant 0 : index
    %c0_10 = arith.constant 0 : index
    %15 = vector.load %arg5[%c0_9, %c0_10] : memref<128x128xf32, #tpu.memory_space<vmem>>, vector<128x128xf32>
    tpu.vector_store %arg5[%c0_9, %c0_10], %14 {strides = array<i32>} : memref<128x128xf32, #tpu.memory_space<vmem>>, vector<128x128xf32>,
    return
  }
  func.func @transform_0(%arg0: i32) -> (i32, i32) {
    %c0_i32 = arith.constant 0 : i32
    %c0_i32_0 = arith.constant 0 : i32
    return %arg0, %c0_i32 : i32, i32
  }
  func.func @transform_1(%arg0: i32) -> (i32, i32) {
    %c0_i32 = arith.constant 0 : i32
    %c0_i32_0 = arith.constant 0 : i32
    return %arg0, %c0_i32 : i32, i32
  }
  func.func @transform_2(%arg0: i32) -> (i32, i32) {
    %c0_i32 = arith.constant 0 : i32
    %c0_i32_0 = arith.constant 0 : i32
    %c0_i32_1 = arith.constant 0 : i32
    return %c0_i32, %c0_i32_0 : i32, i32
  }
  func.func @transform_3(%arg0: i32) -> (i32, i32) {
    %c0_i32 = arith.constant 0 : i32
    %c0_i32_0 = arith.constant 0 : i32
    return %arg0, %c0_i32 : i32, i32
  }
  func.func @transform_4(%arg0: i32) -> (i32, i32) {
    %c0_i32 = arith.constant 0 : i32
    %c0_i32_0 = arith.constant 0 : i32
    return %arg0, %c0_i32 : i32, i32
  }
}

module attributes {stable_mosaic.version = 11 : i64} {
  func.func @_highway_kernel(%arg0: i32, %arg1: memref<64x128xf32, #tpu.memory_space<vmem>>, %arg2: memref<64x128xf32, #tpu.memory_space<vmem>>, %arg3: memref<128x128xf32, #tpu.memory_space<vmem>>, %arg4: memref<1x128xf32, #tpu.memory_space<vmem>>, %arg5: memref<64x128xf32, #tpu.memory_space<vmem>>) attributes {dimension_semantics = [#tpu.dimension_semantics<parallel>], iteration_bounds = array<i64: 1>, scalar_prefetch = 0 : i64, scratch_operands = 0 : i64, tpu.core_type = #tpu.core_type<tc>, window_params = [{transform_indices = @transform_0, window_bounds = array<i64: 64, 128>}, {transform_indices = @transform_1, window_bounds = array<i64: 64, 128>}, {pipeline_mode = #tpu.pipeline_mode<synchronous>, transform_indices = @transform_2, window_bounds = array<i64: 128, 128>}, {pipeline_mode = #tpu.pipeline_mode<synchronous>, transform_indices = @transform_3, window_bounds = array<i64: 1, 128>}, {transform_indices = @transform_4, window_bounds = array<i64: 64, 128>}]} {
    %c0 = arith.constant 0 : index
    %c0_0 = arith.constant 0 : index
    %0 = vector.load %arg1[%c0, %c0_0] : memref<64x128xf32, #tpu.memory_space<vmem>>, vector<64x128xf32>
    %c0_1 = arith.constant 0 : index
    %c0_2 = arith.constant 0 : index
    %1 = vector.load %arg3[%c0_1, %c0_2] : memref<128x128xf32, #tpu.memory_space<vmem>>, vector<128x128xf32>
    %cst = arith.constant dense<0.000000e+00> : vector<64x128xf32>
    %2 = tpu.matmul %0, %1, %cst {dimension_numbers = #tpu.dot_dimension_numbers<[1], [0], [0], [1], [0, 0, 1, 1], [], []>} : vector<64x128xf32>, vector<128x128xf32>, vector<64x128xf32> -> vector<64x128xf32>
    %c0_3 = arith.constant 0 : index
    %c0_4 = arith.constant 0 : index
    %3 = vector.load %arg4[%c0_3, %c0_4] : memref<1x128xf32, #tpu.memory_space<vmem>>, vector<1x128xf32>
    %4 = vector.broadcast %3 : vector<1x128xf32> to vector<64x128xf32>
    %5 = arith.addf %2, %4 : vector<64x128xf32>
    %cst_5 = arith.constant 0.000000e+00 : f32
    %6 = vector.broadcast %cst_5 : f32 to vector<64x128xf32>
    %7 = arith.subf %6, %5 : vector<64x128xf32>
    %8 = math.exp %7 : vector<64x128xf32>
    %cst_6 = arith.constant 1.000000e+00 : f32
    %9 = vector.broadcast %cst_6 : f32 to vector<64x128xf32>
    %10 = arith.addf %9, %8 : vector<64x128xf32>
    %11 = tpu.reciprocal %10 {approx = true} : vector<64x128xf32> -> vector<64x128xf32>
    %c0_7 = arith.constant 0 : index
    %c0_8 = arith.constant 0 : index
    %12 = vector.load %arg2[%c0_7, %c0_8] : memref<64x128xf32, #tpu.memory_space<vmem>>, vector<64x128xf32>
    %13 = arith.mulf %11, %12 : vector<64x128xf32>
    %cst_9 = arith.constant 1.000000e+00 : f32
    %14 = vector.broadcast %cst_9 : f32 to vector<64x128xf32>
    %15 = arith.subf %14, %11 : vector<64x128xf32>
    %c0_10 = arith.constant 0 : index
    %c0_11 = arith.constant 0 : index
    %16 = vector.load %arg1[%c0_10, %c0_11] : memref<64x128xf32, #tpu.memory_space<vmem>>, vector<64x128xf32>
    %17 = arith.mulf %15, %16 : vector<64x128xf32>
    %18 = arith.addf %13, %17 : vector<64x128xf32>
    %c0_12 = arith.constant 0 : index
    %c0_13 = arith.constant 0 : index
    %19 = vector.load %arg5[%c0_12, %c0_13] : memref<64x128xf32, #tpu.memory_space<vmem>>, vector<64x128xf32>
    tpu.vector_store %arg5[%c0_12, %c0_13], %18 {strides = array<i32>} : memref<64x128xf32, #tpu.memory_space<vmem>>, vector<64x128xf32>,
    return
  }
  func.func @transform_0(%arg0: i32) -> (i32, i32) {
    %c0_i32 = arith.constant 0 : i32
    %c0_i32_0 = arith.constant 0 : i32
    return %arg0, %c0_i32 : i32, i32
  }
  func.func @transform_1(%arg0: i32) -> (i32, i32) {
    %c0_i32 = arith.constant 0 : i32
    %c0_i32_0 = arith.constant 0 : i32
    return %arg0, %c0_i32 : i32, i32
  }
  func.func @transform_2(%arg0: i32) -> (i32, i32) {
    %c0_i32 = arith.constant 0 : i32
    %c0_i32_0 = arith.constant 0 : i32
    %c0_i32_1 = arith.constant 0 : i32
    return %c0_i32, %c0_i32_0 : i32, i32
  }
  func.func @transform_3(%arg0: i32) -> (i32, i32) {
    %c0_i32 = arith.constant 0 : i32
    %c0_i32_0 = arith.constant 0 : i32
    %c0_i32_1 = arith.constant 0 : i32
    return %c0_i32, %c0_i32_0 : i32, i32
  }
  func.func @transform_4(%arg0: i32) -> (i32, i32) {
    %c0_i32 = arith.constant 0 : i32
    %c0_i32_0 = arith.constant 0 : i32
    return %arg0, %c0_i32 : i32, i32
  }
}

</mosaic_0001>

<bundles_post_ra>
// kernel: _lambda_.3
= control target key start
LH: loop header
LB: loop body
LE: loop exit
PB: predicated region body
PF: predicated region fallthrough
CT: control target
= control target key end

     0   :  { %v492_v3 = vmov 0.0   ;;  %vm40_vm0 = vcmask 523264   ;;  %s774_s1 = inlined_call_operand.vmem [shape: f32[64,256], index: 1, kind: input, shape index: {}]   ;;  %s775_s2 = inlined_call_operand.vmem [shape: f32[256,128], index: 2, kind: input, shape index: {}]   ;;  %s776_s0 = inlined_call_operand.vmem [shape: f32[64,64], index: 0, kind: input, shape index: {}]   ;;  %s777_s3 = inlined_call_operand.vmem [shape: f32[64,256], index: 3, kind: output, shape index: {0}]   ;;  %s778_s4 = inlined_call_operand.vmem [shape: f32[64,128], index: 4, kind: output, shape index: {1}]  }
   0x1   :  { %v25_v0 = vld [vmem:[%s774_s1 + $0x8] sm:$0xff]  ;;  %v27_v1 = vld [vmem:[%s774_s1 + $0x18] sm:$0xff]  ;;  %v24_v2 = vld [vmem:[%s774_s1] sm:$0xff]  ;;  %129 = vmatprep.mubr.f32.mxu0 %v492_v3 }
   0x2   :  { %v427_v4 = vpack.c.bf16 %v27_v1, %v25_v0  ;;  %v26_v5 = vld [vmem:[%s774_s1 + $0x10] sm:$0xff]  ;;  %v29_v6 = vld [vmem:[%s774_s1 + $0x28] sm:$0xff]  ;;  %v31_v7 = vld [vmem:[%s774_s1 + $0x38] sm:$0xff] }
   0x3   :  { %v429_v8 = vpack.c.bf16 %v26_v5, %v24_v2  ;;  %v431_v9 = vpack.c.bf16 %v31_v7, %v29_v6  ;;  %v28_v10 = vld [vmem:[%s774_s1 + $0x20] sm:$0xff]  ;;  %v30_v11 = vld [vmem:[%s774_s1 + $0x30] sm:$0xff]  ;;  %v33_v12 = vld [vmem:[%s774_s1 + $0x48] sm:$0xff] }
   0x4   :  { %428 = vmatprep.subr.bf16.mxu0 %v427_v4  ;;  %v35_v13 = vld [vmem:[%s774_s1 + $0x58] sm:$0xff]  ;;  %v433_v14 = vpack.c.bf16 %v30_v11, %v28_v10  ;;  %v32_v16 = vld [vmem:[%s774_s1 + $0x40] sm:$0xff]  ;;  %v34_v17 = vld [vmem:[%s774_s1 + $0x50] sm:$0xff] }
   0x5   :  { %430 = vmatpush1.bf16.msra.mxu0 %v429_v8  ;;  %v435_v15 = vpack.c.bf16 %v35_v13, %v33_v12  ;;  %v37_v18 = vld [vmem:[%s774_s1 + $0x68] sm:$0xff]  ;;  %v39_v19 = vld [vmem:[%s774_s1 + $0x78] sm:$0xff]  ;;  %v36_v20 = vld [vmem:[%s774_s1 + $0x60] sm:$0xff]  ;;  %v437_v22 = vpack.c.bf16 %v34_v17, %v32_v16 }
   0x6   :  { %432 = vmatprep.subr.bf16.mxu0 %v431_v9  ;;  %v38_v21 = vld [vmem:[%s774_s1 + $0x70] sm:$0xff]  ;;  %v226_v23 = vld [vmem:[%s775_s2 + $0x80] sm:$0xff]  ;;  %v227_v24 = vld [vmem:[%s775_s2 + $0x88] sm:$0xff]  ;;  %v439_v26 = vpack.c.bf16 %v39_v19, %v37_v18 }
   0x7   :  { %v210_v25 = vld [vmem:[%s775_s2] sm:$0xff]  ;;  %v443_v27 = vpack.c.bf16 %v227_v24, %v226_v23  ;;  %v211_v28 = vld [vmem:[%s775_s2 + $0x8] sm:$0xff]  ;;  %v228_v29 = vld [vmem:[%s775_s2 + $0x90] sm:$0xff]  ;;  %v441_v35 = vpack.c.bf16 %v38_v21, %v36_v20 }
   0x8   :  { %v229_v30 = vld [vmem:[%s775_s2 + $0x98] sm:$0xff]  ;;  %v445_v31 = vpack.c.bf16 %v211_v28, %v210_v25  ;;  %v212_v33 = vld [vmem:[%s775_s2 + $0x10] sm:$0xff]  ;;  %v230_v36 = vld [vmem:[%s775_s2 + $0xa0] sm:$0xff] }
   0x9   :  { %434 = vmatpush1.bf16.msra.mxu0 %v433_v14  ;;  %v447_v32 = vpack.c.bf16 %v229_v30, %v228_v29  ;;  %v213_v34 = vld [vmem:[%s775_s2 + $0x18] sm:$0xff]  ;;  %475 = vmatprep.subr.bf16.mxu1 %v443_v27  ;;  %v231_v37 = vld [vmem:[%s775_s2 + $0xa8] sm:$0xff]  ;;  %v16_v40 = vld [vmem:[%s776_s0] sm:$0xff] }
   0xa   :  { %436 = vmatprep.subr.bf16.mxu0 %v435_v15  ;;  %483 = vmatpush3.bf16.msra.mxu1 %v445_v31  ;;  %v449_v38 = vpack.c.bf16 %v213_v34, %v212_v33  ;;  %v451_v39 = vpack.c.bf16 %v231_v37, %v230_v36  ;;  %v214_v41 = vld [vmem:[%s775_s2 + $0x20] sm:$0xff]  ;;  %v215_v42 = vld [vmem:[%s775_s2 + $0x28] sm:$0xff]  ;;  %v232_v43 = vld [vmem:[%s775_s2 + $0xb0] sm:$0xff] }
   0xb   :  { %476 = vmatprep.subr.bf16.mxu1 %v447_v32  ;;  %v233_v44 = vld [vmem:[%s775_s2 + $0xb8] sm:$0xff]  ;;  %v453_v45 = vpack.c.bf16 %v215_v42, %v214_v41  ;;  %v17_v46 = vld [vmem:[%s776_s0 + $0x8] sm:$0xff]  ;;  %v216_v48 = vld [vmem:[%s775_s2 + $0x30] sm:$0xff] }
   0xc   :  { %v455_v47 = vpack.c.bf16 %v233_v44, %v232_v43  ;;  %v217_v49 = vld [vmem:[%s775_s2 + $0x38] sm:$0xff]  ;;  %v234_v50 = vld [vmem:[%s775_s2 + $0xc0] sm:$0xff]  ;;  %v235_v51 = vld [vmem:[%s775_s2 + $0xc8] sm:$0xff] }
   0xd   :  { %438 = vmatpush1.bf16.msra.mxu0 %v437_v22  ;;  %v457_v52 = vpack.c.bf16 %v217_v49, %v216_v48  ;;  %v18_v53 = vld [vmem:[%s776_s0 + $0x10] sm:$0xff]  ;;  %v459_v54 = vpack.c.bf16 %v235_v51, %v234_v50  ;;  %v218_v55 = vld [vmem:[%s775_s2 + $0x40] sm:$0xff]  ;;  %v219_v56 = vld [vmem:[%s775_s2 + $0x48] sm:$0xff] }
   0xe   :  { %440 = vmatprep.subr.bf16.mxu0 %v439_v26  ;;  %484 = vmatpush3.bf16.msra.mxu1 %v449_v38  ;;  %v236_v57 = vld [vmem:[%s775_s2 + $0xd0] sm:$0xff]  ;;  %v237_v58 = vld [vmem:[%s775_s2 + $0xd8] sm:$0xff]  ;;  %v461_v59 = vpack.c.bf16 %v219_v56, %v218_v55  ;;  %v238_v0 = vld [vmem:[%s775_s2 + $0xe0] sm:$0xff] }
   0xf   :  { %477 = vmatprep.subr.bf16.mxu1 %v451_v39  ;;  %v19_v60 = vld [vmem:[%s776_s0 + $0x18] sm:$0xff]  ;;  %v463_v61 = vpack.c.bf16 %v237_v58, %v236_v57  ;;  %v220_v62 = vld [vmem:[%s775_s2 + $0x50] sm:$0xff]  ;;  %v239_v1 = vld [vmem:[%s775_s2 + $0xe8] sm:$0xff] }
  0x10   :  { %v221_v63 = vld [vmem:[%s775_s2 + $0x58] sm:$0xff]  ;;  %v20_v4 = vld [vmem:[%s776_s0 + $0x20] sm:$0xff]  ;;  %v467_v5 = vpack.c.bf16 %v239_v1, %v238_v0  ;;  %v223_v7 = vld [vmem:[%s775_s2 + $0x68] sm:$0xff] }
  0x11   :  { %442 = vmatpush1.bf16.msra.mxu0 %v441_v35  ;;  %v465_v2 = vpack.c.bf16 %v221_v63, %v220_v62  ;;  %v222_v6 = vld [vmem:[%s775_s2 + $0x60] sm:$0xff]  ;;  %v21_v9 = vld [vmem:[%s776_s0 + $0x28] sm:$0xff]  ;;  %v22_v10 = vld [vmem:[%s776_s0 + $0x30] sm:$0xff] }
  0x12   :  { %444 = vmatprep.subr.bf16.mxu0 %v443_v27  ;;  %485 = vmatpush3.bf16.msra.mxu1 %v453_v45  ;;  %v469_v8 = vpack.c.bf16 %v223_v7, %v222_v6  ;;  %v23_v11 = vld [vmem:[%s776_s0 + $0x38] sm:$0xff]  ;;  %v240_v12 = vld [vmem:[%s775_s2 + $0xf0] sm:$0xff] }
  0x13   :  { %478 = vmatprep.subr.bf16.mxu1 %v455_v47  ;;  %v241_v13 = vld [vmem:[%s775_s2 + $0xf8] sm:$0xff] }
  0x14   :  { %363 = vmatmul.mubr.msk.f32.vlgmr.msra.gmra.mrb[0].mxu0 %vm40_vm0, %v16_v40  ;;  %v471_v14 = vpack.c.bf16 %v241_v13, %v240_v12  ;;  %v225_v15 = vld [vmem:[%s775_s2 + $0x78] sm:$0xff] }
  0x15   :  { %135 = vmatprep.mubr.f32.mxu0 %v492_v3  ;;  %446 = vmatpush3.bf16.msra.mxu0 %v445_v31 }
  0x16   :  { %448 = vmatprep.subr.bf16.mxu0 %v447_v32  ;;  %486 = vmatpush3.bf16.msra.mxu1 %v457_v52 }
  0x17   :  { %479 = vmatprep.subr.bf16.mxu1 %v459_v54 }
  0x18   :  { %364 = vmatmul.mubr.msk.f32.gmra.mrb[2].mxu0 %vm40_vm0, %v17_v46 }
  0x19   :  { %141 = vmatprep.mubr.f32.mxu0 %v492_v3  ;;  %450 = vmatpush3.bf16.msra.mxu0 %v449_v38 }
  0x1a   :  { %452 = vmatprep.subr.bf16.mxu0 %v451_v39  ;;  %487 = vmatpush3.bf16.msra.mxu1 %v461_v59 }
  0x1b   :  { %480 = vmatprep.subr.bf16.mxu1 %v463_v61 }
  0x1c   :  { %365 = vmatmul.mubr.msk.f32.gmra.mrb[4].mxu0 %vm40_vm0, %v18_v53 }
  0x1d   :  { %147 = vmatprep.mubr.f32.mxu0 %v492_v3  ;;  %454 = vmatpush3.bf16.msra.mxu0 %v453_v45 }
  0x1e   :  { %456 = vmatprep.subr.bf16.mxu0 %v455_v47  ;;  %488 = vmatpush3.bf16.msra.mxu1 %v465_v2 }
  0x1f   :  { %481 = vmatprep.subr.bf16.mxu1 %v467_v5 }
  0x20   :  { %366 = vmatmul.mubr.msk.f32.gmra.mrb[6].mxu0 %vm40_vm0, %v19_v60 }
  0x21   :  { %153 = vmatprep.mubr.f32.mxu0 %v492_v3  ;;  %458 = vmatpush3.bf16.msra.mxu0 %v457_v52 }
  0x22   :  { %460 = vmatprep.subr.bf16.mxu0 %v459_v54  ;;  %489 = vmatpush3.bf16.msra.mxu1 %v469_v8 }
  0x23   :  { %482 = vmatprep.subr.bf16.mxu1 %v471_v14 }
  0x24   :  { %367 = vmatmul.mubr.msk.f32.gmra.mrb[8].mxu0 %vm40_vm0, %v20_v4 }
  0x25   :  { %159 = vmatprep.mubr.f32.mxu0 %v492_v3  ;;  %462 = vmatpush3.bf16.msra.mxu0 %v461_v59 }
  0x26   :  { %464 = vmatprep.subr.bf16.mxu0 %v463_v61 }
  0x28   :  { %368 = vmatmul.mubr.msk.f32.gmra.mrb[10].mxu0 %vm40_vm0, %v21_v9 }
  0x29   :  { %165 = vmatprep.mubr.f32.mxu0 %v492_v3  ;;  %466 = vmatpush3.bf16.msra.mxu0 %v465_v2 }
  0x2a   :  { %468 = vmatprep.subr.bf16.mxu0 %v467_v5 }
  0x2c   :  { %369 = vmatmul.mubr.msk.f32.gmra.mrb[12].mxu0 %vm40_vm0, %v22_v10 }
  0x2d   :  { %171 = vmatprep.mubr.f32.mxu0 %v492_v3  ;;  %470 = vmatpush3.bf16.msra.mxu0 %v469_v8  ;;  %v224_v3 = vld [vmem:[%s775_s2 + $0x70] sm:$0xff] }
  0x2e   :  { %v473_v16 = vpack.c.bf16 %v225_v15, %v224_v3  ;;  %472 = vmatprep.subr.bf16.mxu0 %v471_v14 }
  0x30   :  { %370 = vmatmul.mubr.msk.f32.gmra.mrb[14].mxu0 %vm40_vm0, %v23_v11  ;;  %490 = vmatpush3.bf16.msra.mxu1 %v473_v16 }
  0x31   :  { %474 = vmatpush3.bf16.msra.mxu0 %v473_v16 }
  0xe7   :  { %v131_v17 = vpop.f32.mrb[0].mxu0 }
  0xe8   :  { %v178_v18 = vmax.f32 %v131_v17, 0.0  ;;  %v133_v19 = vpop.f32.mrb[1].mxu0 }
  0xe9   :  { %v179_v20 = vmax.f32 %v133_v19, 0.0 }
  0xea   :  { %194 = vst [vmem:[%s777_s3] sm:$0xff] %v178_v18 }
  0xeb   :  { %195 = vst [vmem:[%s777_s3 + $0x8] sm:$0xff] %v179_v20  ;;  %v137_v21 = vpop.f32.mrb[2].mxu0  ;;  %306 = vmatprep.mubr.f32.mxu0 %v179_v20 }
  0xec   :  { %v180_v22 = vmax.f32 %v137_v21, 0.0  ;;  %v139_v23 = vpop.f32.mrb[3].mxu0  ;;  %307 = vmatmul.mubr.f32.vlgmr.msra.gmra.mrb[16].mxu0 %v178_v18 }
  0xed   :  { %v181_v24 = vmax.f32 %v139_v23, 0.0 }
  0xee   :  { %196 = vst [vmem:[%s777_s3 + $0x10] sm:$0xff] %v180_v22 }
  0xef   :  { %197 = vst [vmem:[%s777_s3 + $0x18] sm:$0xff] %v181_v24  ;;  %v143_v25 = vpop.f32.mrb[4].mxu0  ;;  %311 = vmatprep.mubr.f32.mxu0 %v181_v24 }
  0xf0   :  { %v182_v26 = vmax.f32 %v143_v25, 0.0  ;;  %v145_v27 = vpop.f32.mrb[5].mxu0  ;;  %312 = vmatmul.mubr.f32.gmra.mrb[18].mxu0 %v180_v22 }
  0xf1   :  { %v183_v28 = vmax.f32 %v145_v27, 0.0 }
  0xf2   :  { %198 = vst [vmem:[%s777_s3 + $0x20] sm:$0xff] %v182_v26 }
  0xf3   :  { %199 = vst [vmem:[%s777_s3 + $0x28] sm:$0xff] %v183_v28  ;;  %v149_v29 = vpop.f32.mrb[6].mxu0  ;;  %316 = vmatprep.mubr.f32.mxu1 %v183_v28 }
  0xf4   :  { %v184_v30 = vmax.f32 %v149_v29, 0.0  ;;  %v151_v31 = vpop.f32.mrb[7].mxu0  ;;  %317 = vmatmul.mubr.f32.vlgmr.msra.gmra.mrb[0].mxu1 %v182_v26 }
  0xf5   :  { %v185_v32 = vmax.f32 %v151_v31, 0.0 }
  0xf6   :  { %200 = vst [vmem:[%s777_s3 + $0x30] sm:$0xff] %v184_v30 }
  0xf7   :  { %201 = vst [vmem:[%s777_s3 + $0x38] sm:$0xff] %v185_v32  ;;  %v155_v33 = vpop.f32.mrb[8].mxu0  ;;  %321 = vmatprep.mubr.f32.mxu1 %v185_v32 }
  0xf8   :  { %v186_v34 = vmax.f32 %v155_v33, 0.0  ;;  %v157_v35 = vpop.f32.mrb[9].mxu0  ;;  %322 = vmatmul.mubr.f32.gmra.mrb[2].mxu1 %v184_v30 }
  0xf9   :  { %v187_v36 = vmax.f32 %v157_v35, 0.0 }
  0xfa   :  { %202 = vst [vmem:[%s777_s3 + $0x40] sm:$0xff] %v186_v34 }
  0xfb   :  { %203 = vst [vmem:[%s777_s3 + $0x48] sm:$0xff] %v187_v36  ;;  %v161_v37 = vpop.f32.mrb[10].mxu0  ;;  %326 = vmatprep.mubr.f32.mxu1 %v187_v36 }
  0xfc   :  { %v188_v38 = vmax.f32 %v161_v37, 0.0  ;;  %v163_v39 = vpop.f32.mrb[11].mxu0  ;;  %327 = vmatmul.mubr.f32.gmra.mrb[4].mxu1 %v186_v34 }
  0xfd   :  { %v189_v40 = vmax.f32 %v163_v39, 0.0 }
  0xfe   :  { %204 = vst [vmem:[%s777_s3 + $0x50] sm:$0xff] %v188_v38 }
  0xff   :  { %205 = vst [vmem:[%s777_s3 + $0x58] sm:$0xff] %v189_v40  ;;  %v167_v41 = vpop.f32.mrb[12].mxu0  ;;  %331 = vmatprep.mubr.f32.mxu1 %v189_v40 }
 0x100   :  { %v190_v42 = vmax.f32 %v167_v41, 0.0  ;;  %v169_v43 = vpop.f32.mrb[13].mxu0  ;;  %332 = vmatmul.mubr.f32.gmra.mrb[6].mxu1 %v188_v38 }
 0x101   :  { %v191_v44 = vmax.f32 %v169_v43, 0.0 }
 0x102   :  { %206 = vst [vmem:[%s777_s3 + $0x60] sm:$0xff] %v190_v42 }
 0x103   :  { %207 = vst [vmem:[%s777_s3 + $0x68] sm:$0xff] %v191_v44  ;;  %v173_v45 = vpop.f32.mrb[14].mxu0  ;;  %336 = vmatprep.mubr.f32.mxu1 %v191_v44 }
 0x104   :  { %v192_v46 = vmax.f32 %v173_v45, 0.0  ;;  %v175_v47 = vpop.f32.mrb[15].mxu0  ;;  %337 = vmatmul.mubr.f32.gmra.mrb[8].mxu1 %v190_v42 }
 0x105   :  { %v193_v48 = vmax.f32 %v175_v47, 0.0 }
 0x106   :  { %208 = vst [vmem:[%s777_s3 + $0x70] sm:$0xff] %v192_v46 }
 0x107   :  { %209 = vst [vmem:[%s777_s3 + $0x78] sm:$0xff] %v193_v48  ;;  %341 = vmatprep.mubr.f32.mxu1 %v193_v48 }
 0x108   :  { %342 = vmatmul.mubr.f32.gmra.mrb[10].mxu1 %v192_v46 }
 0x1bf   :  { %v403_v49 = vpop.f32.mrb[16].mxu0 }
 0x1c0   :  { %v404_v50 = vpop.f32.mrb[17].mxu0 }
 0x1c1   :  { %v405_v51 = vadd.f32 %v404_v50, %v403_v49 }
 0x1c3   :  { %347 = vst [vmem:[%s778_s4] sm:$0xff] %v405_v51  ;;  %v406_v52 = vpop.f32.mrb[18].mxu0 }
 0x1c4   :  { %v407_v53 = vpop.f32.mrb[19].mxu0 }
 0x1c5   :  { %v408_v54 = vadd.f32 %v407_v53, %v406_v52 }
 0x1c7   :  { %348 = vst [vmem:[%s778_s4 + $0x8] sm:$0xff] %v408_v54  ;;  %v409_v55 = vpop.f32.mrb[0].mxu1 }
 0x1c8   :  { %v410_v56 = vpop.f32.mrb[1].mxu1 }
 0x1c9   :  { %v411_v57 = vadd.f32 %v410_v56, %v409_v55 }
 0x1cb   :  { %349 = vst [vmem:[%s778_s4 + $0x10] sm:$0xff] %v411_v57  ;;  %v412_v58 = vpop.f32.mrb[2].mxu1 }
 0x1cc   :  { %v413_v59 = vpop.f32.mrb[3].mxu1 }
 0x1cd   :  { %v414_v60 = vadd.f32 %v413_v59, %v412_v58 }
 0x1cf   :  { %350 = vst [vmem:[%s778_s4 + $0x18] sm:$0xff] %v414_v60  ;;  %v415_v61 = vpop.f32.mrb[4].mxu1 }
 0x1d0   :  { %v416_v62 = vpop.f32.mrb[5].mxu1 }
 0x1d1   :  { %v417_v63 = vadd.f32 %v416_v62, %v415_v61 }
 0x1d3   :  { %351 = vst [vmem:[%s778_s4 + $0x20] sm:$0xff] %v417_v63  ;;  %v418_v0 = vpop.f32.mrb[6].mxu1 }
 0x1d4   :  { %v419_v1 = vpop.f32.mrb[7].mxu1 }
 0x1d5   :  { %v420_v2 = vadd.f32 %v419_v1, %v418_v0 }
 0x1d7   :  { %352 = vst [vmem:[%s778_s4 + $0x28] sm:$0xff] %v420_v2  ;;  %v421_v4 = vpop.f32.mrb[8].mxu1 }
 0x1d8   :  { %v422_v5 = vpop.f32.mrb[9].mxu1 }
 0x1d9   :  { %v423_v6 = vadd.f32 %v422_v5, %v421_v4 }
 0x1db   :  { %353 = vst [vmem:[%s778_s4 + $0x30] sm:$0xff] %v423_v6  ;;  %v424_v7 = vpop.f32.mrb[10].mxu1 }
 0x1dc   :  { %v425_v8 = vpop.f32.mrb[11].mxu1 }
 0x1dd   :  { %v426_v9 = vadd.f32 %v425_v8, %v424_v7 }
 0x1df   :  { %354 = vst [vmem:[%s778_s4 + $0x38] sm:$0xff] %v426_v9 }

// kernel: _lambda_.4
= control target key start
LH: loop header
LB: loop body
LE: loop exit
PB: predicated region body
PF: predicated region fallthrough
CT: control target
= control target key end

     0   :  { %v612_v0 = vmov 0   ;;  %s958_s1 = inlined_call_operand.vmem [shape: f32[128,1], index: 1, kind: input, shape index: {}]   ;;  %s959_s2 = inlined_call_operand.vmem [shape: f32[128,128], index: 2, kind: input, shape index: {}]   ;;  %s960_s0 = inlined_call_operand.vmem [shape: f32[128,128], index: 0, kind: input, shape index: {}]   ;;  %s961_s3 = inlined_call_operand.vmem [shape: f32[128,128], index: 3, kind: output, shape index: {0}]   ;;  %s962_s4 = inlined_call_operand.vmem [shape: f32[128,128], index: 4, kind: output, shape index: {1}]  }
   0x1   :  { %579 = vset.pattern.permute.xlu1 %v612_v0  ;;  %578 = vset.pattern.permute.xlu0 %v612_v0  ;;  %v33_v1 = vld [vmem:[%s958_s1 + $0x8] sm:$0xff]  ;;  %v32_v2 = vld [vmem:[%s958_s1] sm:$0xff]  ;;  %v42_v5 = vld [vmem:[%s958_s1 + $0x50] sm:$0xff] }
   0x2   :  { %55 = vperm.xlu1 %579, %v33_v1   ;;  %50 = vperm.xlu0 %578, %v32_v2   ;;  %v41_v3 = vld [vmem:[%s958_s1 + $0x48] sm:$0xff]  ;;  %v40_v4 = vld [vmem:[%s958_s1 + $0x40] sm:$0xff]  ;;  %v34_v6 = vld [vmem:[%s958_s1 + $0x10] sm:$0xff] }
   0x3   :  { %v43_v7 = vld [vmem:[%s958_s1 + $0x58] sm:$0xff]  ;;  %v44_v9 = vld [vmem:[%s958_s1 + $0x60] sm:$0xff]  ;;  %v45_v11 = vld [vmem:[%s958_s1 + $0x68] sm:$0xff] }
   0x4   :  { %v35_v8 = vld [vmem:[%s958_s1 + $0x18] sm:$0xff]  ;;  %v36_v10 = vld [vmem:[%s958_s1 + $0x20] sm:$0xff]  ;;  %v37_v12 = vld [vmem:[%s958_s1 + $0x28] sm:$0xff] }
   0x5   :  { %v46_v13 = vld [vmem:[%s958_s1 + $0x70] sm:$0xff]  ;;  %v47_v15 = vld [vmem:[%s958_s1 + $0x78] sm:$0xff]  ;;  %v256_v17 = vld [vmem:[%s959_s2] sm:$0xff] }
   0x6   :  { %95 = vperm.xlu1 %579, %v41_v3   ;;  %90 = vperm.xlu0 %578, %v40_v4   ;;  %v38_v14 = vld [vmem:[%s958_s1 + $0x30] sm:$0xff]  ;;  %v39_v16 = vld [vmem:[%s958_s1 + $0x38] sm:$0xff]  ;;  %v257_v18 = vld [vmem:[%s959_s2 + $0x8] sm:$0xff] }
   0x7   :  { %v258_v19 = vld [vmem:[%s959_s2 + $0x10] sm:$0xff]  ;;  %v529_v20 = vpack.c.bf16 %v257_v18, %v256_v17  ;;  %v259_v21 = vld [vmem:[%s959_s2 + $0x18] sm:$0xff]  ;;  %v260_v23 = vld [vmem:[%s959_s2 + $0x20] sm:$0xff] }
   0x8   :  { %v533_v22 = vpack.c.bf16 %v259_v21, %v258_v19  ;;  %v261_v24 = vld [vmem:[%s959_s2 + $0x28] sm:$0xff]  ;;  %v262_v26 = vld [vmem:[%s959_s2 + $0x30] sm:$0xff]  ;;  %v263_v27 = vld [vmem:[%s959_s2 + $0x38] sm:$0xff] }
   0x9   :  { %530 = vmatprep.subr.bf16.mxu0 %v529_v20  ;;  %561 = vmatprep.subr.bf16.mxu1 %v529_v20  ;;  %v537_v25 = vpack.c.bf16 %v261_v24, %v260_v23  ;;  %v541_v28 = vpack.c.bf16 %v263_v27, %v262_v26  ;;  %v17_v29 = vld [vmem:[%s960_s0 + $0x8] sm:$0xff]  ;;  %v16_v30 = vld [vmem:[%s960_s0] sm:$0xff]  ;;  %v18_v42 = vld [vmem:[%s960_s0 + $0x10] sm:$0xff] }
   0xa   :  { %100 = vperm.xlu1 %579, %v42_v5   ;;  %60 = vperm.xlu0 %578, %v34_v6   ;;  %v24_v35 = vld [vmem:[%s960_s0 + $0x40] sm:$0xff]  ;;  %v25_v38 = vld [vmem:[%s960_s0 + $0x48] sm:$0xff]  ;;  %v26_v46 = vld [vmem:[%s960_s0 + $0x50] sm:$0xff] }
   0xb   :  { %532 = vmatpush3.bf16.msra.mxu0 %v529_v20  ;;  %569 = vmatpush3.bf16.msra.mxu1 %v529_v20  ;;  %v19_v49 = vld [vmem:[%s960_s0 + $0x18] sm:$0xff]  ;;  %v20_v57 = vld [vmem:[%s960_s0 + $0x20] sm:$0xff]  ;;  %v21_v1 = vld [vmem:[%s960_s0 + $0x28] sm:$0xff] }
   0xc   :  { %534 = vmatprep.subr.bf16.mxu0 %v533_v22  ;;  %562 = vmatprep.subr.bf16.mxu1 %v533_v22  ;;  %v27_v54 = vld [vmem:[%s960_s0 + $0x58] sm:$0xff]  ;;  %v28_v62 = vld [vmem:[%s960_s0 + $0x60] sm:$0xff]  ;;  %v265_v6 = vld [vmem:[%s959_s2 + $0x48] sm:$0xff] }
   0xd   :  { %v264_v5 = vld [vmem:[%s959_s2 + $0x40] sm:$0xff]  ;;  %v30_v17 = vld [vmem:[%s960_s0 + $0x70] sm:$0xff]  ;;  %v267_v20 = vld [vmem:[%s959_s2 + $0x58] sm:$0xff] }
   0xe   :  { %105 = vperm.xlu1 %579, %v43_v7   ;;  %65 = vperm.xlu0 %578, %v35_v8   ;;  %v29_v8 = vld [vmem:[%s960_s0 + $0x68] sm:$0xff]  ;;  %v266_v19 = vld [vmem:[%s959_s2 + $0x50] sm:$0xff]  ;;  %v23_v23 = vld [vmem:[%s960_s0 + $0x38] sm:$0xff] }
   0xf   :  { %536 = vmatpush3.bf16.msra.mxu0 %v533_v22  ;;  %570 = vmatpush3.bf16.msra.mxu1 %v533_v22  ;;  %v549_v22 = vpack.c.bf16 %v267_v20, %v266_v19 }
  0x10   :  { %538 = vmatprep.subr.bf16.mxu0 %v537_v25  ;;  %563 = vmatprep.subr.bf16.mxu1 %v537_v25 }
  0x12   :  { %110 = vperm.xlu1 %579, %v44_v9   ;;  %70 = vperm.xlu0 %578, %v36_v10   ;;  %v545_v10 = vpack.c.bf16 %v265_v6, %v264_v5 }
  0x13   :  { %540 = vmatpush3.bf16.msra.mxu0 %v537_v25  ;;  %571 = vmatpush3.bf16.msra.mxu1 %v537_v25 }
  0x14   :  { %542 = vmatprep.subr.bf16.mxu0 %v541_v28  ;;  %564 = vmatprep.subr.bf16.mxu1 %v541_v28 }
  0x16   :  { %115 = vperm.xlu1 %579, %v45_v11   ;;  %75 = vperm.xlu0 %578, %v37_v12   ;;  %v22_v12 = vld [vmem:[%s960_s0 + $0x30] sm:$0xff] }
  0x17   :  { %544 = vmatpush3.bf16.msra.mxu0 %v541_v28  ;;  %572 = vmatpush3.bf16.msra.mxu1 %v541_v28  ;;  %v31_v28 = vld [vmem:[%s960_s0 + $0x78] sm:$0xff] }
  0x18   :  { %546 = vmatprep.subr.bf16.mxu0 %v545_v10  ;;  %565 = vmatprep.subr.bf16.mxu1 %v545_v10 }
  0x1a   :  { %120 = vperm.xlu1 %579, %v46_v13   ;;  %80 = vperm.xlu0 %578, %v38_v14  }
  0x1b   :  { %548 = vmatpush3.bf16.msra.mxu0 %v545_v10  ;;  %573 = vmatpush3.bf16.msra.mxu1 %v545_v10 }
  0x1c   :  { %550 = vmatprep.subr.bf16.mxu0 %v549_v22  ;;  %566 = vmatprep.subr.bf16.mxu1 %v549_v22 }
  0x1e   :  { %125 = vperm.xlu1 %579, %v47_v15   ;;  %85 = vperm.xlu0 %578, %v39_v16  }
  0x1f   :  { %552 = vmatpush3.bf16.msra.mxu0 %v549_v22  ;;  %574 = vmatpush3.bf16.msra.mxu1 %v549_v22 }
  0x81   :  { %v56_v31 = vpop.permute.xlu1 %55  ;;  %v51_v32 = vpop.permute.xlu0 %50 }
  0x82   :  { %v716_v33 = vmul.f32 %v56_v31, %v17_v29  ;;  %v718_v34 = vmul.f32 %v51_v32, %v16_v30  ;;  %v268_v30 = vld [vmem:[%s959_s2 + $0x60] sm:$0xff]  ;;  %v269_v31 = vld [vmem:[%s959_s2 + $0x68] sm:$0xff] }
  0x84   :  { %v144_v36 = vmul.f32 %v718_v34, %v718_v34  ;;  %v145_v41 = vmul.f32 %v716_v33, %v716_v33 }
  0x85   :  { %v96_v37 = vpop.permute.xlu1 %95  ;;  %v91_v39 = vpop.permute.xlu0 %90 }
  0x86   :  { %v728_v40 = vmul.f32 %v91_v39, %v24_v35  ;;  %160 = vadd.xlane.f32.xlu0 %v144_v36  ;;  %v735_v43 = vmul.f32 %v96_v37, %v25_v38  ;;  %v553_v35 = vpack.c.bf16 %v269_v31, %v268_v30  ;;  %v270_v39 = vld [vmem:[%s959_s2 + $0x70] sm:$0xff] }
  0x88   :  { %v152_v44 = vmul.f32 %v728_v40, %v728_v40  ;;  %v153_v52 = vmul.f32 %v735_v43, %v735_v43  ;;  %554 = vmatprep.subr.bf16.mxu0 %v553_v35  ;;  %567 = vmatprep.subr.bf16.mxu1 %v553_v35 }
  0x89   :  { %v101_v45 = vpop.permute.xlu1 %100  ;;  %v61_v47 = vpop.permute.xlu0 %60  ;;  %556 = vmatpush3.bf16.msra.mxu0 %v553_v35  ;;  %575 = vmatpush3.bf16.msra.mxu1 %v553_v35 }
  0x8a   :  { %v742_v48 = vmul.f32 %v61_v47, %v18_v42  ;;  %176 = vadd.xlane.f32.xlu1 %v152_v44  ;;  %162 = vadd.xlane.f32.xlu0 %v145_v41  ;;  %v747_v50 = vmul.f32 %v101_v45, %v26_v46  ;;  %v271_v41 = vld [vmem:[%s959_s2 + $0x78] sm:$0xff] }
  0x8b   :  { %v557_v42 = vpack.c.bf16 %v271_v41, %v270_v39 }
  0x8c   :  { %v146_v51 = vmul.f32 %v742_v48, %v742_v48  ;;  %v154_v60 = vmul.f32 %v747_v50, %v747_v50 }
  0x8d   :  { %v106_v53 = vpop.permute.xlu1 %105  ;;  %v66_v55 = vpop.permute.xlu0 %65  ;;  %558 = vmatprep.subr.bf16.mxu0 %v557_v42  ;;  %568 = vmatprep.subr.bf16.mxu1 %v557_v42 }
  0x8e   :  { %v756_v56 = vmul.f32 %v66_v55, %v19_v49  ;;  %164 = vadd.xlane.f32.xlu1 %v146_v51  ;;  %178 = vadd.xlane.f32.xlu0 %v153_v52  ;;  %v761_v58 = vmul.f32 %v106_v53, %v27_v54 }
  0x8f   :  { %560 = vmatpush3.bf16.msra.mxu0 %v557_v42  ;;  %576 = vmatpush3.bf16.msra.mxu1 %v557_v42 }
  0x90   :  { %v147_v59 = vmul.f32 %v756_v56, %v756_v56  ;;  %v155_v4 = vmul.f32 %v761_v58, %v761_v58 }
  0x91   :  { %v111_v61 = vpop.permute.xlu1 %110  ;;  %v71_v63 = vpop.permute.xlu0 %70 }
  0x92   :  { %v770_v0 = vmul.f32 %v71_v63, %v20_v57  ;;  %166 = vadd.xlane.f32.xlu1 %v147_v59  ;;  %180 = vadd.xlane.f32.xlu0 %v154_v60  ;;  %v775_v2 = vmul.f32 %v111_v61, %v28_v62 }
  0x94   :  { %v148_v3 = vmul.f32 %v770_v0, %v770_v0  ;;  %v156_v15 = vmul.f32 %v775_v2, %v775_v2 }
  0x95   :  { %v116_v7 = vpop.permute.xlu1 %115  ;;  %v76_v9 = vpop.permute.xlu0 %75 }
  0x96   :  { %v790_v11 = vmul.f32 %v76_v9, %v21_v1  ;;  %168 = vadd.xlane.f32.xlu1 %v148_v3  ;;  %182 = vadd.xlane.f32.xlu0 %v155_v4  ;;  %v795_v13 = vmul.f32 %v116_v7, %v29_v8 }
  0x98   :  { %v149_v14 = vmul.f32 %v790_v11, %v790_v11  ;;  %v157_v26 = vmul.f32 %v795_v13, %v795_v13 }
  0x99   :  { %v121_v16 = vpop.permute.xlu1 %120  ;;  %v81_v18 = vpop.permute.xlu0 %80 }
  0x9a   :  { %v810_v21 = vmul.f32 %v81_v18, %v22_v12  ;;  %170 = vadd.xlane.f32.xlu1 %v149_v14  ;;  %184 = vadd.xlane.f32.xlu0 %v156_v15  ;;  %v815_v24 = vmul.f32 %v121_v16, %v30_v17 }
  0x9c   :  { %v150_v25 = vmul.f32 %v810_v21, %v810_v21  ;;  %v158_v38 = vmul.f32 %v815_v24, %v815_v24 }
  0x9d   :  { %v126_v27 = vpop.permute.xlu1 %125  ;;  %v86_v29 = vpop.permute.xlu0 %85 }
  0x9e   :  { %v830_v32 = vmul.f32 %v86_v29, %v23_v23  ;;  %172 = vadd.xlane.f32.xlu1 %v150_v25  ;;  %186 = vadd.xlane.f32.xlu0 %v157_v26  ;;  %v832_v36 = vmul.f32 %v126_v27, %v31_v28 }
  0xa0   :  { %v151_v37 = vmul.f32 %v830_v32, %v830_v32  ;;  %v159_v44 = vmul.f32 %v832_v36, %v832_v36 }
  0xa2   :  { %174 = vadd.xlane.f32.xlu1 %v151_v37  ;;  %188 = vadd.xlane.f32.xlu0 %v158_v38 }
  0xa6   :  { %190 = vadd.xlane.f32.xlu0 %v159_v44 }
 0x113   :  { %v161_v45 = vpop.xlane.xlu0 %160 }
 0x114   :  { %v192_v46 = vmax.f32 %v161_v45, 1e-24 }
 0x116   :  { %580 = vrsqrt.f32 %v192_v46 }
 0x117   :  { %v177_v47 = vpop.xlane.xlu1 %176  ;;  %v163_v49 = vpop.xlane.xlu0 %162 }
 0x118   :  { %v200_v51 = vmax.f32 %v177_v47, 1e-24  ;;  %v193_v52 = vmax.f32 %v163_v49, 1e-24 }
 0x11a   :  { %582 = vrsqrt.f32 %v200_v51 }
 0x11b   :  { %584 = vrsqrt.f32 %v193_v52  ;;  %v165_v53 = vpop.xlane.xlu1 %164  ;;  %v179_v54 = vpop.xlane.xlu0 %178 }
 0x11c   :  { %v194_v55 = vmax.f32 %v165_v53, 1e-24  ;;  %v201_v57 = vmax.f32 %v179_v54, 1e-24 }
 0x11e   :  { %586 = vrsqrt.f32 %v194_v55 }
 0x11f   :  { %588 = vrsqrt.f32 %v201_v57  ;;  %v167_v59 = vpop.xlane.xlu1 %166  ;;  %v181_v60 = vpop.xlane.xlu0 %180 }
 0x120   :  { %v581_v61 = vpop.eup %580  ;;  %v195_v62 = vmax.f32 %v167_v59, 1e-24  ;;  %v202_v63 = vmax.f32 %v181_v60, 1e-24 }
 0x121   :  { %v224_v1 = vmul.f32 %v581_v61, %v718_v34 }
 0x122   :  { %590 = vrsqrt.f32 %v195_v62 }
 0x123   :  { %592 = vrsqrt.f32 %v202_v63  ;;  %v169_v3 = vpop.xlane.xlu1 %168  ;;  %240 = vst [vmem:[%s961_s3] sm:$0xff] %v224_v1  ;;  %505 = vmatprep.mubr.f32.mxu0 %v224_v1  ;;  %v183_v4 = vpop.xlane.xlu0 %182 }
 0x124   :  { %v583_v5 = vpop.eup %582  ;;  %v196_v6 = vmax.f32 %v169_v3, 1e-24  ;;  %v203_v7 = vmax.f32 %v183_v4, 1e-24 }
 0x125   :  { %v585_v8 = vpop.eup %584  ;;  %v232_v9 = vmul.f32 %v583_v5, %v728_v40 }
 0x126   :  { %594 = vrsqrt.f32 %v196_v6  ;;  %v225_v10 = vmul.f32 %v585_v8, %v716_v33 }
 0x127   :  { %596 = vrsqrt.f32 %v203_v7  ;;  %248 = vst [vmem:[%s961_s3 + $0x40] sm:$0xff] %v232_v9  ;;  %517 = vmatprep.mubr.f32.mxu1 %v232_v9  ;;  %v171_v34 = vpop.xlane.xlu1 %170  ;;  %v185_v12 = vpop.xlane.xlu0 %184 }
 0x128   :  { %v587_v14 = vpop.eup %586  ;;  %v197_v15 = vmax.f32 %v171_v34, 1e-24  ;;  %241 = vst [vmem:[%s961_s3 + $0x8] sm:$0xff] %v225_v10  ;;  %506 = vmatmul.mubr.f32.vlgmr.msra.gmra.mrb[0].mxu0 %v225_v10  ;;  %v204_v16 = vmax.f32 %v185_v12, 1e-24 }
 0x129   :  { %v589_v40 = vpop.eup %588  ;;  %v226_v17 = vmul.f32 %v587_v14, %v742_v48 }
 0x12a   :  { %598 = vrsqrt.f32 %v197_v15  ;;  %v233_v33 = vmul.f32 %v589_v40, %v735_v43 }
 0x12b   :  { %600 = vrsqrt.f32 %v204_v16  ;;  %v173_v18 = vpop.xlane.xlu1 %172  ;;  %242 = vst [vmem:[%s961_s3 + $0x10] sm:$0xff] %v226_v17  ;;  %508 = vmatprep.mubr.f32.mxu0 %v226_v17  ;;  %v187_v19 = vpop.xlane.xlu0 %186 }
 0x12c   :  { %v591_v20 = vpop.eup %590  ;;  %v198_v22 = vmax.f32 %v173_v18, 1e-24  ;;  %249 = vst [vmem:[%s961_s3 + $0x48] sm:$0xff] %v233_v33  ;;  %518 = vmatmul.mubr.f32.vlgmr.msra.gmra.mrb[0].mxu1 %v233_v33  ;;  %v205_v23 = vmax.f32 %v187_v19, 1e-24 }
 0x12d   :  { %v593_v48 = vpop.eup %592  ;;  %v227_v25 = vmul.f32 %v591_v20, %v756_v56 }
 0x12e   :  { %602 = vrsqrt.f32 %v198_v22  ;;  %v234_v43 = vmul.f32 %v593_v48, %v747_v50 }
 0x12f   :  { %604 = vrsqrt.f32 %v205_v23  ;;  %v175_v26 = vpop.xlane.xlu1 %174  ;;  %243 = vst [vmem:[%s961_s3 + $0x18] sm:$0xff] %v227_v25  ;;  %509 = vmatmul.mubr.f32.gmra.mrb[2].mxu0 %v227_v25  ;;  %v189_v27 = vpop.xlane.xlu0 %188 }
 0x130   :  { %v595_v28 = vpop.eup %594  ;;  %v199_v29 = vmax.f32 %v175_v26, 1e-24  ;;  %250 = vst [vmem:[%s961_s3 + $0x50] sm:$0xff] %v234_v43  ;;  %520 = vmatprep.mubr.f32.mxu1 %v234_v43  ;;  %v206_v30 = vmax.f32 %v189_v27, 1e-24 }
 0x131   :  { %v597_v56 = vpop.eup %596  ;;  %v228_v31 = vmul.f32 %v595_v28, %v770_v0 }
 0x132   :  { %606 = vrsqrt.f32 %v199_v29  ;;  %v235_v50 = vmul.f32 %v597_v56, %v761_v58 }
 0x133   :  { %608 = vrsqrt.f32 %v206_v30  ;;  %244 = vst [vmem:[%s961_s3 + $0x20] sm:$0xff] %v228_v31  ;;  %511 = vmatprep.mubr.f32.mxu0 %v228_v31  ;;  %v191_v35 = vpop.xlane.xlu0 %190 }
 0x134   :  { %v599_v37 = vpop.eup %598  ;;  %251 = vst [vmem:[%s961_s3 + $0x58] sm:$0xff] %v235_v50  ;;  %521 = vmatmul.mubr.f32.gmra.mrb[2].mxu1 %v235_v50  ;;  %v207_v38 = vmax.f32 %v191_v35, 1e-24 }
 0x135   :  { %v601_v39 = vpop.eup %600  ;;  %v229_v0 = vmul.f32 %v599_v37, %v790_v11 }
 0x136   :  { %610 = vrsqrt.f32 %v207_v38  ;;  %v236_v58 = vmul.f32 %v601_v39, %v775_v2 }
 0x137   :  { %245 = vst [vmem:[%s961_s3 + $0x28] sm:$0xff] %v229_v0  ;;  %512 = vmatmul.mubr.f32.gmra.mrb[4].mxu0 %v229_v0 }
 0x138   :  { %v603_v41 = vpop.eup %602  ;;  %252 = vst [vmem:[%s961_s3 + $0x60] sm:$0xff] %v236_v58  ;;  %523 = vmatprep.mubr.f32.mxu1 %v236_v58 }
 0x139   :  { %v605_v42 = vpop.eup %604  ;;  %v230_v44 = vmul.f32 %v603_v41, %v810_v21 }
 0x13a   :  { %v237_v45 = vmul.f32 %v605_v42, %v795_v13 }
 0x13b   :  { %246 = vst [vmem:[%s961_s3 + $0x30] sm:$0xff] %v230_v44  ;;  %514 = vmatprep.mubr.f32.mxu0 %v230_v44 }
 0x13c   :  { %v607_v2 = vpop.eup %606  ;;  %253 = vst [vmem:[%s961_s3 + $0x68] sm:$0xff] %v237_v45  ;;  %524 = vmatmul.mubr.f32.gmra.mrb[4].mxu1 %v237_v45 }
 0x13d   :  { %v609_v11 = vpop.eup %608  ;;  %v231_v46 = vmul.f32 %v607_v2, %v830_v32 }
 0x13e   :  { %v238_v47 = vmul.f32 %v609_v11, %v815_v24 }
 0x13f   :  { %247 = vst [vmem:[%s961_s3 + $0x38] sm:$0xff] %v231_v46  ;;  %515 = vmatmul.mubr.f32.gmra.mrb[6].mxu0 %v231_v46 }
 0x140   :  { %v611_v13 = vpop.eup %610  ;;  %254 = vst [vmem:[%s961_s3 + $0x70] sm:$0xff] %v238_v47  ;;  %526 = vmatprep.mubr.f32.mxu1 %v238_v47 }
 0x141   :  { %v239_v21 = vmul.f32 %v611_v13, %v832_v36 }
 0x143   :  { %255 = vst [vmem:[%s961_s3 + $0x78] sm:$0xff] %v239_v21  ;;  %527 = vmatmul.mubr.f32.gmra.mrb[6].mxu1 %v239_v21 }
 0x1fb   :  { %v507_v32 = vpop.f32.mrb[0].mxu0 }
 0x1fc   :  { %418 = vst [vmem:[%s962_s4 + $0x8] sm:$0xff] %v507_v32  ;;  %v338_v24 = vpop.f32.mrb[1].mxu0 }
 0x1fd   :  { %417 = vst [vmem:[%s962_s4] sm:$0xff] %v338_v24 }
 0x1ff   :  { %v519_v49 = vpop.f32.mrb[0].mxu1 }
 0x200   :  { %426 = vst [vmem:[%s962_s4 + $0x48] sm:$0xff] %v519_v49  ;;  %v378_v36 = vpop.f32.mrb[1].mxu1 }
 0x201   :  { %425 = vst [vmem:[%s962_s4 + $0x40] sm:$0xff] %v378_v36 }
 0x202   :  { %v510_v51 = vpop.f32.mrb[2].mxu0 }
 0x203   :  { %420 = vst [vmem:[%s962_s4 + $0x18] sm:$0xff] %v510_v51  ;;  %v348_v52 = vpop.f32.mrb[3].mxu0 }
 0x204   :  { %419 = vst [vmem:[%s962_s4 + $0x10] sm:$0xff] %v348_v52 }
 0x207   :  { %v522_v53 = vpop.f32.mrb[2].mxu1 }
 0x208   :  { %428 = vst [vmem:[%s962_s4 + $0x58] sm:$0xff] %v522_v53  ;;  %v388_v54 = vpop.f32.mrb[3].mxu1 }
 0x209   :  { %427 = vst [vmem:[%s962_s4 + $0x50] sm:$0xff] %v388_v54 }
 0x20a   :  { %v513_v55 = vpop.f32.mrb[4].mxu0 }
 0x20b   :  { %422 = vst [vmem:[%s962_s4 + $0x28] sm:$0xff] %v513_v55  ;;  %v358_v57 = vpop.f32.mrb[5].mxu0 }
 0x20c   :  { %421 = vst [vmem:[%s962_s4 + $0x20] sm:$0xff] %v358_v57 }
 0x20f   :  { %v525_v59 = vpop.f32.mrb[4].mxu1 }
 0x210   :  { %430 = vst [vmem:[%s962_s4 + $0x68] sm:$0xff] %v525_v59  ;;  %v398_v60 = vpop.f32.mrb[5].mxu1 }
 0x211   :  { %429 = vst [vmem:[%s962_s4 + $0x60] sm:$0xff] %v398_v60 }
 0x212   :  { %v516_v61 = vpop.f32.mrb[6].mxu0 }
 0x213   :  { %424 = vst [vmem:[%s962_s4 + $0x38] sm:$0xff] %v516_v61  ;;  %v368_v62 = vpop.f32.mrb[7].mxu0 }
 0x214   :  { %423 = vst [vmem:[%s962_s4 + $0x30] sm:$0xff] %v368_v62 }
 0x216   :  { %v528_v63 = vpop.f32.mrb[6].mxu1 }
 0x217   :  { %432 = vst [vmem:[%s962_s4 + $0x78] sm:$0xff] %v528_v63  ;;  %v408_v1 = vpop.f32.mrb[7].mxu1 }
 0x218   :  { %431 = vst [vmem:[%s962_s4 + $0x70] sm:$0xff] %v408_v1 }

// kernel: _lambda_.5
= control target key start
LH: loop header
LB: loop body
LE: loop exit
PB: predicated region body
PF: predicated region fallthrough
CT: control target
= control target key end

     0   :  { %s605_s0 = inlined_call_operand.vmem [shape: f32[64,128], index: 0, kind: input, shape index: {}]   ;;  %s606_s1 = inlined_call_operand.vmem [shape: f32[64,128], index: 1, kind: input, shape index: {}]   ;;  %s607_s2 = inlined_call_operand.vmem [shape: f32[128,128], index: 2, kind: input, shape index: {}]   ;;  %s608_s3 = inlined_call_operand.vmem [shape: f32[1,128], index: 3, kind: input, shape index: {}]   ;;  %s609_s4 = inlined_call_operand.hbm [shape: f32[64,128], index: 4, kind: output, shape index: {}]  }
   0x1   :  { %v26_v0 = vld [vmem:[%s607_s2] sm:$0xff]  ;;  %v27_v1 = vld [vmem:[%s607_s2 + $0x8] sm:$0xff]  ;;  %v28_v2 = vld [vmem:[%s607_s2 + $0x10] sm:$0xff] }
   0x2   :  { %v327_v3 = vpack.c.bf16 %v27_v1, %v26_v0  ;;  %v29_v4 = vld [vmem:[%s607_s2 + $0x18] sm:$0xff]  ;;  %v30_v6 = vld [vmem:[%s607_s2 + $0x20] sm:$0xff]  ;;  %v31_v7 = vld [vmem:[%s607_s2 + $0x28] sm:$0xff] }
   0x3   :  { %v331_v5 = vpack.c.bf16 %v29_v4, %v28_v2  ;;  %v335_v8 = vpack.c.bf16 %v31_v7, %v30_v6  ;;  %v483_v9 = vld [vmem:[%s605_s0] sm:$0xff]  ;;  %v32_v11 = vld [vmem:[%s607_s2 + $0x30] sm:$0xff]  ;;  %v33_v12 = vld [vmem:[%s607_s2 + $0x38] sm:$0xff] }
   0x4   :  { %328 = vmatprep.subr.bf16.mxu0 %v327_v3  ;;  %359 = vmatprep.subr.bf16.mxu1 %v327_v3  ;;  %v488_v10 = vld [vmem:[%s605_s0 + $0x20] sm:$0xff] }
   0x5   :  { %330 = vmatpush3.bf16.msra.mxu0 %v327_v3  ;;  %367 = vmatpush3.bf16.msra.mxu1 %v327_v3 }
   0x6   :  { %332 = vmatprep.subr.bf16.mxu0 %v331_v5  ;;  %360 = vmatprep.subr.bf16.mxu1 %v331_v5 }
   0x7   :  { %315 = vmatprep.mubr.f32.mxu0 %v483_v9  ;;  %321 = vmatprep.mubr.f32.mxu1 %v488_v10 }
   0x9   :  { %334 = vmatpush3.bf16.msra.mxu0 %v331_v5  ;;  %368 = vmatpush3.bf16.msra.mxu1 %v331_v5 }
   0xa   :  { %9 = vsyncpa [#allocation3], 0  ;;  %336 = vmatprep.subr.bf16.mxu0 %v335_v8  ;;  %361 = vmatprep.subr.bf16.mxu1 %v335_v8  ;;  %v339_v13 = vpack.c.bf16 %v33_v12, %v32_v11  ;;  %v34_v14 = vld [vmem:[%s607_s2 + $0x40] sm:$0xff]  ;;  %v35_v15 = vld [vmem:[%s607_s2 + $0x48] sm:$0xff]  ;;  %s434_s26 = smov [#allocation2]  }
   0xb   :  { %v343_v16 = vpack.c.bf16 %v35_v15, %v34_v14  ;;  %v36_v17 = vld [vmem:[%s607_s2 + $0x50] sm:$0xff]  ;;  %v37_v18 = vld [vmem:[%s607_s2 + $0x58] sm:$0xff]  ;;  %v38_v20 = vld [vmem:[%s607_s2 + $0x60] sm:$0xff]  ;;  %s247_s27 = sshll.u32 %s434_s26, 4  ;;  %s248_s27 = int_to_ptr.vmem [resolvable:$true] %s247_s27 }
   0xc   :  { %v347_v19 = vpack.c.bf16 %v37_v18, %v36_v17  ;;  %v39_v21 = vld [vmem:[%s607_s2 + $0x68] sm:$0xff]  ;;  %v40_v23 = vld [vmem:[%s607_s2 + $0x70] sm:$0xff]  ;;  %v41_v24 = vld [vmem:[%s607_s2 + $0x78] sm:$0xff]  ;;  %p415_p1 = scmp.lt.s32.totalorder %s248_s27, %s248_s27 }
   0xd   :  { %338 = vmatpush3.bf16.msra.mxu0 %v335_v8  ;;  %369 = vmatpush3.bf16.msra.mxu1 %v335_v8  ;;  %v351_v22 = vpack.c.bf16 %v39_v21, %v38_v20  ;;  %v355_v25 = vpack.c.bf16 %v41_v24, %v40_v23  ;;  %v525_v26 = vld [vmem:[%s605_s0 + $0x8] sm:$0xff]  ;;  %v535_v28 = vld [vmem:[%s605_s0 + $0x10] sm:$0xff]  ;;  %v549_v30 = vld [vmem:[%s605_s0 + $0x18] sm:$0xff] }
   0xe   :  { %340 = vmatprep.subr.bf16.mxu0 %v339_v13  ;;  %362 = vmatprep.subr.bf16.mxu1 %v339_v13  ;;  %v530_v27 = vld [vmem:[%s605_s0 + $0x28] sm:$0xff]  ;;  %v540_v29 = vld [vmem:[%s605_s0 + $0x30] sm:$0xff]  ;;  %v554_v31 = vld [vmem:[%s605_s0 + $0x38] sm:$0xff] }
   0xf   :  { %v258_v32 = vld [vmem:[%s608_s3] ss:$0 sm:$0xff]  ;;  %v195_v20 = vld [vmem:[%s606_s1 + $0x8] sm:$0xff] }
  0x10   :  { %v199_v23 = vld [vmem:[%s606_s1 + $0x28] sm:$0xff] }
  0x11   :  { %342 = vmatpush3.bf16.msra.mxu0 %v339_v13  ;;  %370 = vmatpush3.bf16.msra.mxu1 %v339_v13 }
  0x12   :  { %344 = vmatprep.subr.bf16.mxu0 %v343_v16  ;;  %363 = vmatprep.subr.bf16.mxu1 %v343_v16 }
  0x15   :  { %346 = vmatpush3.bf16.msra.mxu0 %v343_v16  ;;  %371 = vmatpush3.bf16.msra.mxu1 %v343_v16 }
  0x16   :  { %348 = vmatprep.subr.bf16.mxu0 %v347_v19  ;;  %364 = vmatprep.subr.bf16.mxu1 %v347_v19 }
  0x19   :  { %350 = vmatpush3.bf16.msra.mxu0 %v347_v19  ;;  %372 = vmatpush3.bf16.msra.mxu1 %v347_v19 }
  0x1a   :  { %352 = vmatprep.subr.bf16.mxu0 %v351_v22  ;;  %365 = vmatprep.subr.bf16.mxu1 %v351_v22 }
  0x1d   :  { %354 = vmatpush3.bf16.msra.mxu0 %v351_v22  ;;  %373 = vmatpush3.bf16.msra.mxu1 %v351_v22 }
  0x1e   :  { %356 = vmatprep.subr.bf16.mxu0 %v355_v25  ;;  %366 = vmatprep.subr.bf16.mxu1 %v355_v25 }
  0x21   :  { %358 = vmatpush3.bf16.msra.mxu0 %v355_v25  ;;  %374 = vmatpush3.bf16.msra.mxu1 %v355_v25 }
  0x24   :  { %316 = vmatmul.mubr.f32.vlgmr.msra.gmra.mrb[0].mxu0 %v525_v26  ;;  %322 = vmatmul.mubr.f32.vlgmr.msra.gmra.mrb[0].mxu1 %v530_v27 }
  0x25   :  { %318 = vmatprep.mubr.f32.mxu0 %v535_v28  ;;  %324 = vmatprep.mubr.f32.mxu1 %v540_v29 }
  0x28   :  { %319 = vmatmul.mubr.f32.gmra.mrb[2].mxu0 %v549_v30  ;;  %325 = vmatmul.mubr.f32.gmra.mrb[2].mxu1 %v554_v31 }
  0xf7   :  { %v317_v33 = vpop.f32.mrb[0].mxu0  ;;  %v323_v34 = vpop.f32.mrb[0].mxu1 }
  0xf8   :  { %v121_v35 = vadd.f32 %v317_v33, %v258_v32  ;;  %v141_v36 = vadd.f32 %v323_v34, %v258_v32  ;;  %v115_v37 = vpop.f32.mrb[1].mxu0  ;;  %v135_v38 = vpop.f32.mrb[1].mxu1 }
  0xf9   :  { %v116_v39 = vadd.f32 %v258_v32, %v115_v37  ;;  %v136_v40 = vadd.f32 %v258_v32, %v135_v38  ;;  %v198_v37 = vld [vmem:[%s606_s1 + $0x20] sm:$0xff] }
  0xfa   :  { %v155_v41 = vsub.f32 0.0, %v121_v35  ;;  %v159_v42 = vsub.f32 0.0, %v141_v36 }
  0xfb   :  { %v154_v43 = vsub.f32 0.0, %v116_v39  ;;  %v158_v44 = vsub.f32 0.0, %v136_v40  ;;  %v320_v45 = vpop.f32.mrb[2].mxu0  ;;  %v326_v46 = vpop.f32.mrb[2].mxu1 }
  0xfc   :  { %v164_v47 = vmul.f32 1.442695, %v155_v41  ;;  %v172_v48 = vmul.f32 1.442695, %v159_v42  ;;  %v131_v49 = vadd.f32 %v320_v45, %v258_v32  ;;  %v151_v50 = vadd.f32 %v326_v46, %v258_v32  ;;  %v125_v51 = vpop.f32.mrb[3].mxu0  ;;  %v145_v52 = vpop.f32.mrb[3].mxu1 }
  0xfd   :  { %v162_v53 = vmul.f32 1.442695, %v154_v43  ;;  %v170_v54 = vmul.f32 1.442695, %v158_v44  ;;  %v126_v55 = vadd.f32 %v258_v32, %v125_v51  ;;  %v146_v56 = vadd.f32 %v258_v32, %v145_v52  ;;  %v194_v32 = vld [vmem:[%s606_s1] sm:$0xff]  ;;  %v197_v42 = vld [vmem:[%s606_s1 + $0x18] sm:$0xff] }
  0xfe   :  { %378 = vpow2.f32 %v164_v47  ;;  %v157_v57 = vsub.f32 0.0, %v131_v49  ;;  %v161_v58 = vsub.f32 0.0, %v151_v50  ;;  %v201_v47 = vld [vmem:[%s606_s1 + $0x38] sm:$0xff]  ;;  %v196_v52 = vld [vmem:[%s606_s1 + $0x10] sm:$0xff] }
  0xff   :  { %380 = vpow2.f32 %v172_v48  ;;  %v156_v59 = vsub.f32 0.0, %v126_v55  ;;  %v160_v60 = vsub.f32 0.0, %v146_v56 }
 0x100   :  { %382 = vpow2.f32 %v162_v53  ;;  %v168_v61 = vmul.f32 1.442695, %v157_v57  ;;  %v176_v62 = vmul.f32 1.442695, %v161_v58  ;;  %v200_v57 = vld [vmem:[%s606_s1 + $0x30] sm:$0xff]  ;;  %s410_s1 = scalar_lea.vmem %s248_s27, 1024 }
 0x101   :  { %384 = vpow2.f32 %v170_v54  ;;  %v166_v63 = vmul.f32 1.442695, %v156_v59  ;;  %v174_v0 = vmul.f32 1.442695, %v160_v60  ;;  %p411_p0 = scmp.ne.s32.totalorder %s248_s27, %s410_s1  ;;  %p416_p2 = scmp.lt.s32.totalorder %s410_s1, %s410_s1 }
 0x102   :  { %386 = vpow2.f32 %v168_v61 }
 0x103   :  { %388 = vpow2.f32 %v176_v62  ;;  %p417_p3 = por %p416_p2, %p415_p1 }
 0x104   :  { %390 = vpow2.f32 %v166_v63 }
 0x105   :  { %392 = vpow2.f32 %v174_v0  ;;  %p418_p4 = pnand %p417_p3, %p411_p0 }
 0x108   :  { %v379_v1 = vpop.eup %378 }
 0x109   :  { %v381_v2 = vpop.eup %380  ;;  %v179_v3 = vadd.f32 1.0, %v379_v1 }
 0x10a   :  { %v383_v4 = vpop.eup %382  ;;  %v183_v5 = vadd.f32 1.0, %v381_v2 }
 0x10b   :  { %v385_v6 = vpop.eup %384  ;;  %394 = vrcp.f32 %v179_v3  ;;  %v178_v7 = vadd.f32 1.0, %v383_v4 }
 0x10c   :  { %v387_v8 = vpop.eup %386  ;;  %396 = vrcp.f32 %v183_v5  ;;  %v182_v11 = vadd.f32 1.0, %v385_v6 }
 0x10d   :  { %v389_v12 = vpop.eup %388  ;;  %398 = vrcp.f32 %v178_v7  ;;  %v181_v13 = vadd.f32 1.0, %v387_v8 }
 0x10e   :  { %v391_v14 = vpop.eup %390  ;;  %400 = vrcp.f32 %v182_v11  ;;  %v185_v15 = vadd.f32 1.0, %v389_v12 }
 0x10f   :  { %v393_v16 = vpop.eup %392  ;;  %402 = vrcp.f32 %v181_v13  ;;  %v180_v17 = vadd.f32 1.0, %v391_v14 }
 0x110   :  { %404 = vrcp.f32 %v185_v15  ;;  %v184_v18 = vadd.f32 1.0, %v393_v16 }
 0x111   :  { %406 = vrcp.f32 %v180_v17 }
 0x112   :  { %408 = vrcp.f32 %v184_v18 }
 0x115   :  { %v395_v19 = vpop.eup %394 }
 0x116   :  { %v397_v21 = vpop.eup %396  ;;  %v211_v22 = vsub.f32 1.0, %v395_v19  ;;  %v203_v34 = vmul.f32 %v395_v19, %v195_v20 }
 0x117   :  { %v399_v24 = vpop.eup %398  ;;  %v215_v25 = vsub.f32 1.0, %v397_v21  ;;  %v207_v39 = vmul.f32 %v397_v21, %v199_v23 }
 0x118   :  { %v401_v33 = vpop.eup %400  ;;  %v219_v35 = vmul.f32 %v211_v22, %v525_v26  ;;  %v210_v36 = vsub.f32 1.0, %v399_v24  ;;  %v202_v45 = vmul.f32 %v399_v24, %v194_v32 }
 0x119   :  { %v403_v38 = vpop.eup %402  ;;  %v223_v40 = vmul.f32 %v215_v25, %v530_v27  ;;  %v214_v41 = vsub.f32 1.0, %v401_v33  ;;  %v206_v50 = vmul.f32 %v401_v33, %v198_v37 }
 0x11a   :  { %v405_v43 = vpop.eup %404  ;;  %v227_v44 = vadd.f32 %v219_v35, %v203_v34  ;;  %v218_v46 = vmul.f32 %v210_v36, %v483_v9  ;;  %v213_v26 = vsub.f32 1.0, %v403_v38  ;;  %v205_v55 = vmul.f32 %v403_v38, %v197_v42 }
 0x11b   :  { %v407_v48 = vpop.eup %406  ;;  %v231_v49 = vadd.f32 %v223_v40, %v207_v39  ;;  %v222_v27 = vmul.f32 %v214_v41, %v488_v10  ;;  %v217_v51 = vsub.f32 1.0, %v405_v43  ;;  %v209_v59 = vmul.f32 %v405_v43, %v201_v47 }
 0x11c   :  { %v409_v53 = vpop.eup %408  ;;  %235 = vst [vmem:[#allocation2 + $0x8] sm:$0xff] %v227_v44  ;;  %v226_v54 = vadd.f32 %v218_v46, %v202_v45  ;;  %v221_v9 = vmul.f32 %v213_v26, %v549_v30  ;;  %v212_v56 = vsub.f32 1.0, %v407_v48  ;;  %v204_v62 = vmul.f32 %v407_v48, %v196_v52 }
 0x11d   :  { %239 = vst [vmem:[#allocation2 + $0x28] sm:$0xff] %v231_v49  ;;  %v230_v58 = vadd.f32 %v222_v27, %v206_v50  ;;  %v225_v10 = vmul.f32 %v217_v51, %v554_v31  ;;  %v216_v60 = vsub.f32 1.0, %v409_v53  ;;  %v208_v0 = vmul.f32 %v409_v53, %v200_v57 }
 0x11e   :  { %234 = vst [vmem:[#allocation2] sm:$0xff] %v226_v54  ;;  %v229_v61 = vadd.f32 %v221_v9, %v205_v55  ;;  %v220_v63 = vmul.f32 %v212_v56, %v535_v28 }
 0x11f   :  { %238 = vst [vmem:[#allocation2 + $0x20] sm:$0xff] %v230_v58  ;;  %v233_v30 = vadd.f32 %v225_v10, %v209_v59  ;;  %v224_v1 = vmul.f32 %v216_v60, %v540_v29 }
 0x120   :  { %237 = vst [vmem:[#allocation2 + $0x18] sm:$0xff] %v229_v61  ;;  %v228_v2 = vadd.f32 %v220_v63, %v204_v62 }
 0x121   :  { %241 = vst [vmem:[#allocation2 + $0x38] sm:$0xff] %v233_v30  ;;  %v232_v3 = vadd.f32 %v224_v1, %v208_v0 }
 0x122   :  { %236 = vst [vmem:[#allocation2 + $0x10] sm:$0xff] %v228_v2 }
 0x123   :  { %240 = vst [vmem:[#allocation2 + $0x30] sm:$0xff] %v232_v3 }
 0x124   :  { %421 = shalt.err (!%p418_p4)
}
 0x125   :  { %s422_s29 = scalar_lea.hbm %s609_s4, 1024 }
 0x126   :  { %p423_p5 = scmp.ne.s32.totalorder %s609_s4, %s422_s29  ;;  %p426_p6 = scmp.lt.u32.totalorder %s422_s29, %s609_s4 }
 0x128   :  { %p428_p7 = pnand %p426_p6, %p423_p5 }
 0x12a   :  { %431 = shalt.err (!%p428_p7)
}
 0x12b   :  { %s435_s8 = smov 128   ;;  %s436_s9 = smov 8  }
 0x12c   :  { %253 = dma.vmem_to_hbm [thread:$0]  %s248_s27, 1024, %s609_s4, [#allocation3], %s435_s8, %s435_s8, %s436_s9  }
 0x12d   :  { %432 = dma.done.wait [#allocation3], 1024  }
 0x12e   :  { %433 = vsyncadd [#allocation3], 4294966272 }
 0x12f   :  { %257 = vsyncpa [#allocation3], 1 }

</bundles_post_ra>
